<compile_context>
chip_gen: v7x
topology: tpu7x:2x2x1
jax: 0.10.0
libtpu: 0.0.40
codegen_flags: <defaults>
</compile_context>

<pallas_src>
import jax
import jax.numpy as jnp
from jax.experimental import pallas as pl
from jax.experimental.pallas import tpu as pltpu


def _mlp_kernel(h_ref, w1_ref, b1_ref, w2_ref, b2_ref, w3_ref, b3_ref, o_ref):
    # Hot path: three MXU matmuls (bf16 operands, f32 accumulate) + f32 bias/ReLU.
    # Operands arrive already in the compute dtype -> no per-step casts of weights.
    x = h_ref[...]

    y1 = jnp.dot(x, w1_ref[...], preferred_element_type=jnp.float32)
    y1 = jnp.maximum(y1 + b1_ref[...], 0.0)

    y2 = jnp.dot(y1.astype(w2_ref.dtype), w2_ref[...],
                 preferred_element_type=jnp.float32)
    y2 = jnp.maximum(y2 + b2_ref[...], 0.0)

    y3 = jnp.dot(y2.astype(w3_ref.dtype), w3_ref[...],
                 preferred_element_type=jnp.float32)
    o_ref[...] = (y3 + b3_ref[...]).astype(o_ref.dtype)


def _round_up(x, m):
    return ((x + m - 1) // m) * m


def _num_tensorcores():
    """2 TensorCores/chip on v7x; 1 on v5e/v6e. Conservative fallback: 1."""
    try:
        kind = (getattr(jax.devices()[0], "device_kind", "") or "").lower()
        if "v7" in kind or "7x" in kind:
            return 2
    except Exception:  # pragma: no cover
        pass
    return 1


def _vmem_capacity_bytes():
    try:
        return int(pltpu.get_tpu_info().vmem_capacity_bytes)
    except Exception:  # pragma: no cover - conservative (v7x) fallback
        return 64 * 1024 * 1024


def _default_block_b(B, d_in, d_hid, d_out, io_bytes, vmem_capacity, num_tc):
    """Batch tile that pipelines well, never blows VMEM, and feeds all TCs.

    Per-row, per-step VMEM footprint: double-buffered h/out tiles (io dtype) plus
    the compiler-materialized f32 intermediates (y1, y2, y3) and the io-dtype
    copies of y1/y2 feeding dots 2/3.
    """
    per_row = (2 * (d_in + d_out) * io_bytes      # double-buffered in/out tiles
               + (2 * d_hid + d_out) * 4          # y1, y2, y3 in f32
               + 2 * d_hid * io_bytes)            # casts feeding dots 2 and 3
    budget = vmem_capacity // 4
    cap = max(16, (budget // per_row) // 16 * 16)
    # Bigger tiles amortize the ~0.35 us/step overhead; bound by generation VMEM.
    target = min(2048 if vmem_capacity <= (64 << 20) else 4096, cap)

    if num_tc < 2 or B <= 32:
        # Single TensorCore (v5e/v6e) or tiny batch: one tile if it fits.
        return min(B, target)

    # Multi-TC (v7x): keep the grid-step count a multiple of num_tc so the
    # "parallel" axis shards evenly across TensorCores.
    steps = max(num_tc, pl.cdiv(B, target))
    steps = _round_up(steps, num_tc)
    return min(B, _round_up(pl.cdiv(B, steps), 16))


def contrastive_head_forward(h, params, *, block_b=None,
                             compute_dtype=jnp.bfloat16, out_dtype=None):
    """Pallas forward of ContrastiveHead.

    h:      [B, D_in]   (D_in = 256 for the module default W=256)
    params: dict with w1 [D_in, D_hid], b1 [1, D_hid],
                      w2 [D_hid, D_hid], b2 [1, D_hid],
                      w3 [D_hid, D_out], b3 [1, D_out]
    For best performance pass h (and store params) already in bf16; the wrapper
    casts only if needed. Use compute_dtype=jnp.float32 for f32 parity checks.
    Returns [B, D_out] in `out_dtype` (defaults to compute_dtype).
    """
    B, D_in = h.shape
    D_hid = params["w1"].shape[1]
    D_out = params["w3"].shape[1]
    out_dtype = compute_dtype if out_dtype is None else out_dtype
    io_bytes = jnp.dtype(compute_dtype).itemsize

    # Cast once at the boundary (no per-step casts inside the kernel).
    h_c = h if h.dtype == compute_dtype else h.astype(compute_dtype)
    w1 = params["w1"].astype(compute_dtype)
    w2 = params["w2"].astype(compute_dtype)
    w3 = params["w3"].astype(compute_dtype)
    # Biases stay f32: bias-add/ReLU run on the VPU in f32 (v5e has no bf16 VPU).
    b1 = params["b1"].astype(jnp.float32)
    b2 = params["b2"].astype(jnp.float32)
    b3 = params["b3"].astype(jnp.float32)

    vmem_capacity = _vmem_capacity_bytes()
    num_tc = _num_tensorcores()

    if block_b is None:
        block_b = _default_block_b(B, D_in, D_hid, D_out, io_bytes,
                                   vmem_capacity, num_tc)
    block_b = min(block_b, B)

    grid = (pl.cdiv(B, block_b),)

    # Scoped-VMEM limit: resident weights + double-buffered h/out tiles + f32
    # intermediates + compute-dtype copies, with 2x headroom, capped at half of
    # physical VMEM (v7x scoped cap is 32 MiB of its 64 MiB).
    weights_bytes = sum(int(v.size) * v.dtype.itemsize
                        for v in (w1, b1, w2, b2, w3, b3))
    needed = (weights_bytes
              + 2 * block_b * (D_in + D_out) * io_bytes
              + block_b * (2 * D_hid + D_out) * 4
              + 2 * block_b * D_hid * io_bytes)
    vmem_limit = int(min(vmem_capacity // 2, max(2 * needed, 16 * 1024 * 1024)))

    cost = pl.CostEstimate(
        flops=2 * B * (D_in * D_hid + D_hid * D_hid + D_hid * D_out),
        transcendentals=0,
        bytes_accessed=weights_bytes
        + B * D_in * io_bytes
        + B * D_out * jnp.dtype(out_dtype).itemsize,
    )

    # Weights/biases: constant index_map -> fetched once, VMEM-resident.
    full = lambda shape: pl.BlockSpec(shape, lambda i: (0, 0))

    return pl.pallas_call(
        _mlp_kernel,
        out_shape=jax.ShapeDtypeStruct((B, D_out), out_dtype),
        grid_spec=pltpu.PrefetchScalarGridSpec(
            num_scalar_prefetch=0,
            grid=grid,
            in_specs=[
                pl.BlockSpec((block_b, D_in), lambda i: (i, 0)),  # h tile (streams)
                full((D_in, D_hid)),   # w1
                full((1, D_hid)),      # b1
                full((D_hid, D_hid)),  # w2
                full((1, D_hid)),      # b2
                full((D_hid, D_out)),  # w3
                full((1, D_out)),      # b3
            ],
            out_specs=pl.BlockSpec((block_b, D_out), lambda i: (i, 0)),
        ),
        compiler_params=pltpu.CompilerParams(
            dimension_semantics=("parallel",),
            vmem_limit_bytes=vmem_limit,
        ),
        cost_estimate=cost,
    )(h_c, w1, b1, w2, b2, w3, b3)


def init_params(key, W=256, dtype=jnp.float32):
    """Deterministic init matching the module's layer shapes.

    nn.Linear(fan_in, fan_out) default init: U(-1/sqrt(fan_in), 1/sqrt(fan_in))
    for weight and bias.  Weights stored as [in, out].
    """
    W2 = W * 2
    d_in, d_hid, d_out = W2 // 2, W2 // 4, W2 // 2  # 256, 128, 256
    ks = jax.random.split(key, 6)

    def uni(k, shape, fan_in):
        bound = 1.0 / jnp.sqrt(fan_in)
        return jax.random.uniform(k, shape, dtype, -bound, bound)

    return {
        "w1": uni(ks[0], (d_in, d_hid), d_in),
        "b1": uni(ks[1], (1, d_hid), d_in),
        "w2": uni(ks[2], (d_hid, d_hid), d_hid),
        "b2": uni(ks[3], (1, d_hid), d_hid),
        "w3": uni(ks[4], (d_hid, d_out), d_hid),
        "b3": uni(ks[5], (1, d_out), d_hid),
    }


def reference_forward(h, p, compute_dtype=jnp.bfloat16):
    """Pure-JAX reference matching the kernel's compute-dtype MXU / f32-accumulate path."""
    def mm(x, w):
        return jnp.dot(x.astype(compute_dtype), w.astype(compute_dtype),
                       preferred_element_type=jnp.float32)
    y = jnp.maximum(mm(h, p["w1"]) + p["b1"].astype(jnp.float32), 0.0)
    y = jnp.maximum(mm(y, p["w2"]) + p["b2"].astype(jnp.float32), 0.0)
    return mm(y, p["w3"]) + p["b3"].astype(jnp.float32)


if __name__ == "__main__":
    key = jax.random.PRNGKey(0)
    k_param, k_h = jax.random.split(key)

    W = 256   # module default -> dims 256 / 128 / 256
    B = 16    # small test batch
    params = init_params(k_param, W=W)
    h = jax.random.normal(k_h, (B, W), dtype=jnp.float32)

    # Fast path: bf16 activations/weights at the pallas_call boundary, f32 accumulate.
    out = contrastive_head_forward(h, params)
    out = jax.block_until_ready(out)
    assert out.shape == (B, W), out.shape
    ref = reference_forward(h, params, compute_dtype=jnp.bfloat16)
    assert jnp.allclose(out.astype(jnp.float32), ref, atol=5e-2, rtol=5e-2), \
        "bf16 path mismatch vs reference"

    # f32 parity path (closer to the pure-f32 PyTorch module arithmetic).
    out_f32 = contrastive_head_forward(h, params, compute_dtype=jnp.float32,
                                       out_dtype=jnp.float32)
    out_f32 = jax.block_until_ready(out_f32)
    ref_f32 = reference_forward(h, params, compute_dtype=jnp.float32)
    assert jnp.allclose(out_f32, ref_f32, atol=5e-2, rtol=5e-2), \
        "f32 path mismatch vs reference"

    print("KERNEL_OK")
</pallas_src>

<mosaic_0001>
module attributes {stable_mosaic.version = 11 : i64} {
  func.func @_mlp_kernel(%arg0: i32, %arg1: memref<16x256xbf16, #tpu.memory_space<vmem>>, %arg2: memref<256x128xbf16, #tpu.memory_space<vmem>>, %arg3: memref<1x128xf32, #tpu.memory_space<vmem>>, %arg4: memref<128x128xbf16, #tpu.memory_space<vmem>>, %arg5: memref<1x128xf32, #tpu.memory_space<vmem>>, %arg6: memref<128x256xbf16, #tpu.memory_space<vmem>>, %arg7: memref<1x256xf32, #tpu.memory_space<vmem>>, %arg8: memref<16x256xbf16, #tpu.memory_space<vmem>>) attributes {dimension_semantics = [#tpu.dimension_semantics<parallel>], iteration_bounds = array<i64: 1>, scalar_prefetch = 0 : i64, scratch_operands = 0 : i64, tpu.core_type = #tpu.core_type<tc>, window_params = [{transform_indices = @transform_0, window_bounds = array<i64: 16, 256>}, {pipeline_mode = #tpu.pipeline_mode<synchronous>, transform_indices = @transform_1, window_bounds = array<i64: 256, 128>}, {pipeline_mode = #tpu.pipeline_mode<synchronous>, transform_indices = @transform_2, window_bounds = array<i64: 1, 128>}, {pipeline_mode = #tpu.pipeline_mode<synchronous>, transform_indices = @transform_3, window_bounds = array<i64: 128, 128>}, {pipeline_mode = #tpu.pipeline_mode<synchronous>, transform_indices = @transform_4, window_bounds = array<i64: 1, 128>}, {pipeline_mode = #tpu.pipeline_mode<synchronous>, transform_indices = @transform_5, window_bounds = array<i64: 128, 256>}, {pipeline_mode = #tpu.pipeline_mode<synchronous>, transform_indices = @transform_6, window_bounds = array<i64: 1, 256>}, {transform_indices = @transform_7, window_bounds = array<i64: 16, 256>}]} {
    %c0 = arith.constant 0 : index
    %c0_0 = arith.constant 0 : index
    %0 = vector.load %arg1[%c0, %c0_0] : memref<16x256xbf16, #tpu.memory_space<vmem>>, vector<16x256xbf16>
    %c0_1 = arith.constant 0 : index
    %c0_2 = arith.constant 0 : index
    %1 = vector.load %arg2[%c0_1, %c0_2] : memref<256x128xbf16, #tpu.memory_space<vmem>>, vector<256x128xbf16>
    %cst = arith.constant dense<0.000000e+00> : vector<16x128xf32>
    %2 = tpu.matmul %0, %1, %cst {dimension_numbers = #tpu.dot_dimension_numbers<[1], [0], [0], [1], [0, 0, 1, 1], [], []>} : vector<16x256xbf16>, vector<256x128xbf16>, vector<16x128xf32> -> vector<16x128xf32>
    %c0_3 = arith.constant 0 : index
    %c0_4 = arith.constant 0 : index
    %3 = vector.load %arg3[%c0_3, %c0_4] : memref<1x128xf32, #tpu.memory_space<vmem>>, vector<1x128xf32>
    %4 = vector.broadcast %3 : vector<1x128xf32> to vector<16x128xf32>
    %5 = arith.addf %2, %4 : vector<16x128xf32>
    %cst_5 = arith.constant 0.000000e+00 : f32
    %6 = vector.broadcast %cst_5 : f32 to vector<16x128xf32>
    %7 = arith.maximumf %5, %6 : vector<16x128xf32>
    %8 = arith.truncf %7 : vector<16x128xf32> to vector<16x128xbf16>
    %c0_6 = arith.constant 0 : index
    %c0_7 = arith.constant 0 : index
    %9 = vector.load %arg4[%c0_6, %c0_7] : memref<128x128xbf16, #tpu.memory_space<vmem>>, vector<128x128xbf16>
    %cst_8 = arith.constant dense<0.000000e+00> : vector<16x128xf32>
    %10 = tpu.matmul %8, %9, %cst_8 {dimension_numbers = #tpu.dot_dimension_numbers<[1], [0], [0], [1], [0, 0, 1, 1], [], []>} : vector<16x128xbf16>, vector<128x128xbf16>, vector<16x128xf32> -> vector<16x128xf32>
    %c0_9 = arith.constant 0 : index
    %c0_10 = arith.constant 0 : index
    %11 = vector.load %arg5[%c0_9, %c0_10] : memref<1x128xf32, #tpu.memory_space<vmem>>, vector<1x128xf32>
    %12 = vector.broadcast %11 : vector<1x128xf32> to vector<16x128xf32>
    %13 = arith.addf %10, %12 : vector<16x128xf32>
    %cst_11 = arith.constant 0.000000e+00 : f32
    %14 = vector.broadcast %cst_11 : f32 to vector<16x128xf32>
    %15 = arith.maximumf %13, %14 : vector<16x128xf32>
    %16 = arith.truncf %15 : vector<16x128xf32> to vector<16x128xbf16>
    %c0_12 = arith.constant 0 : index
    %c0_13 = arith.constant 0 : index
    %17 = vector.load %arg6[%c0_12, %c0_13] : memref<128x256xbf16, #tpu.memory_space<vmem>>, vector<128x256xbf16>
    %cst_14 = arith.constant dense<0.000000e+00> : vector<16x256xf32>
    %18 = tpu.matmul %16, %17, %cst_14 {dimension_numbers = #tpu.dot_dimension_numbers<[1], [0], [0], [1], [0, 0, 1, 1], [], []>} : vector<16x128xbf16>, vector<128x256xbf16>, vector<16x256xf32> -> vector<16x256xf32>
    %c0_15 = arith.constant 0 : index
    %c0_16 = arith.constant 0 : index
    %19 = vector.load %arg7[%c0_15, %c0_16] : memref<1x256xf32, #tpu.memory_space<vmem>>, vector<1x256xf32>
    %20 = vector.broadcast %19 : vector<1x256xf32> to vector<16x256xf32>
    %21 = arith.addf %18, %20 : vector<16x256xf32>
    %22 = arith.truncf %21 : vector<16x256xf32> to vector<16x256xbf16>
    %c0_17 = arith.constant 0 : index
    %c0_18 = arith.constant 0 : index
    %23 = vector.load %arg8[%c0_17, %c0_18] : memref<16x256xbf16, #tpu.memory_space<vmem>>, vector<16x256xbf16>
    tpu.vector_store %arg8[%c0_17, %c0_18], %22 {strides = array<i32>} : memref<16x256xbf16, #tpu.memory_space<vmem>>, vector<16x256xbf16>,
    return
  }
  func.func @transform_0(%arg0: i32) -> (i32, i32) {
    %c0_i32 = arith.constant 0 : i32
    %c0_i32_0 = arith.constant 0 : i32
    return %arg0, %c0_i32 : i32, i32
  }
  func.func @transform_1(%arg0: i32) -> (i32, i32) {
    %c0_i32 = arith.constant 0 : i32
    %c0_i32_0 = arith.constant 0 : i32
    %c0_i32_1 = arith.constant 0 : i32
    return %c0_i32, %c0_i32_0 : i32, i32
  }
  func.func @transform_2(%arg0: i32) -> (i32, i32) {
    %c0_i32 = arith.constant 0 : i32
    %c0_i32_0 = arith.constant 0 : i32
    %c0_i32_1 = arith.constant 0 : i32
    return %c0_i32, %c0_i32_0 : i32, i32
  }
  func.func @transform_3(%arg0: i32) -> (i32, i32) {
    %c0_i32 = arith.constant 0 : i32
    %c0_i32_0 = arith.constant 0 : i32
    %c0_i32_1 = arith.constant 0 : i32
    return %c0_i32, %c0_i32_0 : i32, i32
  }
  func.func @transform_4(%arg0: i32) -> (i32, i32) {
    %c0_i32 = arith.constant 0 : i32
    %c0_i32_0 = arith.constant 0 : i32
    %c0_i32_1 = arith.constant 0 : i32
    return %c0_i32, %c0_i32_0 : i32, i32
  }
  func.func @transform_5(%arg0: i32) -> (i32, i32) {
    %c0_i32 = arith.constant 0 : i32
    %c0_i32_0 = arith.constant 0 : i32
    %c0_i32_1 = arith.constant 0 : i32
    return %c0_i32, %c0_i32_0 : i32, i32
  }
  func.func @transform_6(%arg0: i32) -> (i32, i32) {
    %c0_i32 = arith.constant 0 : i32
    %c0_i32_0 = arith.constant 0 : i32
    %c0_i32_1 = arith.constant 0 : i32
    return %c0_i32, %c0_i32_0 : i32, i32
  }
  func.func @transform_7(%arg0: i32) -> (i32, i32) {
    %c0_i32 = arith.constant 0 : i32
    %c0_i32_0 = arith.constant 0 : i32
    return %arg0, %c0_i32 : i32, i32
  }
}

</mosaic_0001>

<bundles_post_ra>
// kernel: tpu_custom_call.1
= control target key start
LH: loop header
LB: loop body
LE: loop exit
PB: predicated region body
PF: predicated region fallthrough
CT: control target
= control target key end

     0   :  { %12 = vsyncpa [#allocation3], 0  ;;  %s996_s0 = inlined_call_operand.hbm [shape: bf16[16,256], index: 0, kind: input, shape index: {}]   ;;  %s997_s1 = inlined_call_operand.hbm [shape: bf16[256,128], index: 1, kind: input, shape index: {}]   ;;  %s998_s2 = inlined_call_operand.vmem [shape: f32[1,128], index: 2, kind: input, shape index: {}]   ;;  %s999_s3 = inlined_call_operand.hbm [shape: bf16[128,128], index: 3, kind: input, shape index: {}]   ;;  %s1000_s4 = inlined_call_operand.vmem [shape: f32[1,128], index: 4, kind: input, shape index: {}]   ;;  %s1001_s5 = inlined_call_operand.hbm [shape: bf16[128,256], index: 5, kind: input, shape index: {}]   ;;  %s1002_s6 = inlined_call_operand.vmem [shape: f32[1,256], index: 6, kind: input, shape index: {}]   ;;  %s1003_s7 = inlined_call_operand.hbm [shape: bf16[16,256], index: 7, kind: output, shape index: {}]  }
   0x1   :  { %13 = vsyncpa [#allocation6], 0 }
   0x2   :  { %14 = vsyncpa [#allocation9], 0 }
   0x3   :  { %15 = vsyncpa [#allocation4], 0  ;;  %s853_s24 = smov [#allocation5]   ;;  %s735_s28 = scalar_lea.hbm %s997_s1, 2048 }
   0x4   :  { %s33_s25 = sshll.u32 %s853_s24, 4  ;;  %p736_p0 = scmp.ne.s32.totalorder %s997_s1, %s735_s28  ;;  %s34_s25 = int_to_ptr.vmem [resolvable:$true] %s33_s25 }
   0x5   :  { %p739_p1 = scmp.lt.u32.totalorder %s735_s28, %s997_s1 }
   0x7   :  { %p741_p2 = pnand %p739_p1, %p736_p0 }
   0x9   :  { %744 = shalt.err (!%p741_p2)
}
   0xa   :  { %s745_s10 = scalar_lea.vmem %s34_s25, 2048  ;;  %p750_p4 = scmp.lt.s32.totalorder %s34_s25, %s34_s25 }
   0xb   :  { %p746_p3 = scmp.ne.s32.totalorder %s34_s25, %s745_s10  ;;  %p751_p5 = scmp.lt.s32.totalorder %s745_s10, %s745_s10 }
   0xd   :  { %p752_p6 = por %p751_p5, %p750_p4 }
   0xf   :  { %p753_p7 = pnand %p752_p6, %p746_p3 }
  0x11   :  { %756 = shalt.err (!%p753_p7)
}
  0x12   :  { %s854_s11 = smov 64   ;;  %s855_s12 = smov 4  }
  0x13   :  { %39 = dma.hbm_to_vmem [thread:$0]  %s997_s1, 2048, %s34_s25, [#allocation6], %s854_s11, %s854_s11, %s855_s12  }
  0x14   :  { %s856_s15 = smov [#allocation2]   ;;  %s757_s19 = scalar_lea.hbm %s996_s0, 256 }
  0x15   :  { %s21_s16 = sshll.u32 %s856_s15, 4  ;;  %p758_p8 = scmp.ne.s32.totalorder %s996_s0, %s757_s19  ;;  %s22_s16 = int_to_ptr.vmem [resolvable:$true] %s21_s16 }
  0x16   :  { %p761_p9 = scmp.lt.u32.totalorder %s757_s19, %s996_s0 }
  0x18   :  { %p763_p10 = pnand %p761_p9, %p758_p8 }
  0x1a   :  { %766 = shalt.err (!%p763_p10)
}
  0x1b   :  { %s767_s24 = scalar_lea.vmem %s22_s16, 256  ;;  %p772_p12 = scmp.lt.s32.totalorder %s22_s16, %s22_s16 }
  0x1c   :  { %p768_p11 = scmp.ne.s32.totalorder %s22_s16, %s767_s24  ;;  %p773_p13 = scmp.lt.s32.totalorder %s767_s24, %s767_s24 }
  0x1e   :  { %p774_p0 = por %p773_p13, %p772_p12 }
  0x20   :  { %p775_p1 = pnand %p774_p0, %p768_p11 }
  0x22   :  { %778 = shalt.err (!%p775_p1)
}
  0x23   :  { %s857_s1 = smov 128   ;;  %s858_s25 = smov 8  }
  0x24   :  { %27 = dma.hbm_to_vmem [thread:$0]  %s996_s0, 256, %s22_s16, [#allocation3], %s857_s1, %s857_s1, %s858_s25  }
  0x25   :  { %s859_s28 = smov [#allocation7]   ;;  %s860_s30 = smov [#allocation8]  }
  0x26   :  { %s47_s29 = sshll.u32 %s859_s28, 4  ;;  %s61_s8 = sshll.u32 %s860_s30, 4  ;;  %s48_s29 = int_to_ptr.vmem [resolvable:$true] %s47_s29  ;;  %s935_s8 = int_to_ptr.vmem [resolvable:$true] %s61_s8 }
  0x27   :  { %s779_s13 = scalar_lea.hbm %s999_s3, 1024 }
  0x28   :  { %p780_p2 = scmp.ne.s32.totalorder %s999_s3, %s779_s13  ;;  %p783_p3 = scmp.lt.u32.totalorder %s779_s13, %s999_s3 }
  0x2a   :  { %p785_p4 = pnand %p783_p3, %p780_p2 }
  0x2c   :  { %788 = shalt.err (!%p785_p4)
}
  0x2d   :  { %s789_s0 = scalar_lea.vmem %s48_s29, 1024  ;;  %p794_p6 = scmp.lt.s32.totalorder %s48_s29, %s48_s29 }
  0x2e   :  { %p790_p5 = scmp.ne.s32.totalorder %s48_s29, %s789_s0  ;;  %p795_p7 = scmp.lt.s32.totalorder %s789_s0, %s789_s0 }
  0x30   :  { %p796_p8 = por %p795_p7, %p794_p6 }
  0x32   :  { %p797_p9 = pnand %p796_p8, %p790_p5 }
  0x34   :  { %800 = shalt.err (!%p797_p9)
}
  0x35   :  { %53 = dma.hbm_to_vmem [thread:$0]  %s999_s3, 1024, %s48_s29, [#allocation6], %s854_s11, %s854_s11, %s855_s12  }
  0x36   :  { %s801_s22 = scalar_lea.hbm %s1001_s5, 2048 }
  0x37   :  { %p802_p10 = scmp.ne.s32.totalorder %s1001_s5, %s801_s22  ;;  %p805_p11 = scmp.lt.u32.totalorder %s801_s22, %s1001_s5 }
  0x39   :  { %p807_p12 = pnand %p805_p11, %p802_p10 }
  0x3b   :  { %810 = shalt.err (!%p807_p12)
}
  0x3c   :  { %s811_s28 = scalar_lea.vmem %s935_s8, 2048  ;;  %p816_p0 = scmp.lt.s32.totalorder %s935_s8, %s935_s8 }
  0x3d   :  { %p812_p13 = scmp.ne.s32.totalorder %s935_s8, %s811_s28  ;;  %p817_p1 = scmp.lt.s32.totalorder %s811_s28, %s811_s28 }
  0x3f   :  { %p818_p2 = por %p817_p1, %p816_p0 }
  0x41   :  { %p819_p3 = pnand %p818_p2, %p812_p13 }
  0x43   :  { %822 = shalt.err (!%p819_p3)
}
  0x44   :  { %67 = dma.hbm_to_vmem [thread:$0]  %s1001_s5, 2048, %s935_s8, [#allocation9], %s857_s1, %s857_s1, %s858_s25  }
  0x45   :  { %845 = dma.done.wait [#allocation3], 256  }
  0x46   :  { %846 = vsyncadd [#allocation3], 4294967040 }
  0x47   :  { %847 = dma.done.wait [#allocation6], 3072  }
  0x48   :  { %848 = vsyncadd [#allocation6], 4294964224 }
  0x49   :  { %849 = dma.done.wait [#allocation9], 2048  }
  0x4a   :  { %850 = vsyncadd [#allocation9], 4294965248  ;;  %v861_v0 = vmov 0.0   ;;  %v684_v1 = vld [vmem:[#allocation5 + $0x40] sm:$0xff]   ;;  %v686_v3 = vld [vmem:[#allocation5 + $0x48] sm:$0xff]   ;;  %vm862_vm0 = vmmov 0  }
  0x4b   :  { %652 = vmatprep.subr.bf16.mxu1 %v861_v0  ;;  %v685_v2 = vld [vmem:[#allocation5] sm:$0xff]   ;;  %621 = vmatprep.subr.bf16.mxu0 %v684_v1  ;;  %v687_v4 = vld [vmem:[#allocation5 + $0x8] sm:$0xff]   ;;  %v688_v5 = vld [vmem:[#allocation5 + $0x50] sm:$0xff]   ;;  %v863_v55 = vmov 0  }
  0x4c   :  { %622 = vmatpush3.bf16.msra.mxu0 %v685_v2  ;;  %v689_v6 = vld [vmem:[#allocation5 + $0x10] sm:$0xff]   ;;  %v690_v7 = vld [vmem:[#allocation5 + $0x58] sm:$0xff]   ;;  %v692_v9 = vld [vmem:[#allocation5 + $0x60] sm:$0xff]   ;;  %668 = vmatprep.mubr.msk.bf16.mxu1 %vm862_vm0, %v861_v0  ;;  %v407_v2 = vlaneseq }
  0x4d   :  { %623 = vmatprep.subr.bf16.mxu0 %v686_v3  ;;  %v691_v8 = vld [vmem:[#allocation5 + $0x18] sm:$0xff]   ;;  %v693_v10 = vld [vmem:[#allocation5 + $0x20] sm:$0xff]   ;;  %v694_v11 = vld [vmem:[#allocation5 + $0x68] sm:$0xff]  }
  0x4e   :  { %v695_v12 = vld [vmem:[#allocation5 + $0x28] sm:$0xff]   ;;  %v702_v13 = vld [vmem:[#allocation2 + $0x4] ss:$8 sps:$4 sm:$0xff]   ;;  %v703_v14 = vld [vmem:[#allocation7] sm:$0xff]   ;;  %v408_v3 = vshrl.u32 %v407_v2, 7 }
  0x4f   :  { %v696_v15 = vld [vmem:[#allocation5 + $0x70] sm:$0xff]   ;;  %262 = vmatprep.mubr.bf16.mxu0 %v702_v13  ;;  %653 = vmatpush3.bf16.msra.mxu1 %v703_v14  ;;  %v704_v16 = vld [vmem:[#allocation7 + $0x8] sm:$0xff]   ;;  %v698_v18 = vld [vmem:[#allocation5 + $0x78] sm:$0xff]  }
  0x50   :  { %624 = vmatpush3.bf16.msra.mxu0 %v687_v4  ;;  %v697_v17 = vld [vmem:[#allocation5 + $0x30] sm:$0xff]   ;;  %654 = vmatprep.subr.bf16.mxu1 %v861_v0  ;;  %v699_v20 = vld [vmem:[#allocation5 + $0x38] sm:$0xff]   ;;  %v707_v23 = vld [vmem:[#allocation7 + $0x20] sm:$0xff]   ;;  %v409_v4 = vsub.s32 0, %v408_v3 }
  0x51   :  { %625 = vmatprep.subr.bf16.mxu0 %v688_v5  ;;  %v705_v19 = vld [vmem:[#allocation7 + $0x10] sm:$0xff]   ;;  %v706_v21 = vld [vmem:[#allocation7 + $0x18] sm:$0xff]   ;;  %v708_v24 = vld [vmem:[#allocation7 + $0x28] sm:$0xff]  }
  0x52   :  { %v700_v22 = vld [vmem:[#allocation2] ss:$8 sps:$4 sm:$0xff]   ;;  %v711_v27 = vld [vmem:[#allocation8] ss:$8 sps:$4 sm:$0xff]   ;;  %v713_v28 = vld [vmem:[#allocation8 + $0x4] ss:$8 sps:$4 sm:$0xff]  }
  0x53   :  { %655 = vmatpush3.bf16.msra.mxu1 %v704_v16  ;;  %v709_v25 = vld [vmem:[#allocation7 + $0x30] sm:$0xff]   ;;  %v710_v26 = vld [vmem:[#allocation7 + $0x38] sm:$0xff]   ;;  %v719_v31 = vld [vmem:[#allocation8 + $0x24] ss:$8 sps:$4 sm:$0xff]  }
  0x54   :  { %626 = vmatpush3.bf16.msra.mxu0 %v689_v6  ;;  %656 = vmatprep.subr.bf16.mxu1 %v861_v0  ;;  %v716_v29 = vld [vmem:[#allocation8 + $0x14] ss:$8 sps:$4 sm:$0xff]   ;;  %v714_v30 = vld [vmem:[#allocation8 + $0x10] ss:$8 sps:$4 sm:$0xff]   ;;  %v717_v32 = vld [vmem:[#allocation8 + $0x20] ss:$8 sps:$4 sm:$0xff]  }
  0x55   :  { %627 = vmatprep.subr.bf16.mxu0 %v690_v7  ;;  %v722_v33 = vld [vmem:[#allocation8 + $0x34] ss:$8 sps:$4 sm:$0xff]   ;;  %v720_v34 = vld [vmem:[#allocation8 + $0x30] ss:$8 sps:$4 sm:$0xff]   ;;  %v725_v35 = vld [vmem:[#allocation8 + $0x44] ss:$8 sps:$4 sm:$0xff]  }
  0x56   :  { %v723_v36 = vld [vmem:[#allocation8 + $0x40] ss:$8 sps:$4 sm:$0xff]   ;;  %v728_v37 = vld [vmem:[#allocation8 + $0x54] ss:$8 sps:$4 sm:$0xff]   ;;  %v726_v38 = vld [vmem:[#allocation8 + $0x50] ss:$8 sps:$4 sm:$0xff]  }
  0x57   :  { %657 = vmatpush3.bf16.msra.mxu1 %v705_v19  ;;  %v573_v40 = vld [vmem:[%s998_s2] ss:$0 sm:$0xff]  ;;  %v731_v51 = vld [vmem:[#allocation8 + $0x64] ss:$8 sps:$4 sm:$0xff]   ;;  %v729_v52 = vld [vmem:[#allocation8 + $0x60] ss:$8 sps:$4 sm:$0xff]  }
  0x58   :  { %628 = vmatpush3.bf16.msra.mxu0 %v691_v8  ;;  %658 = vmatprep.subr.bf16.mxu1 %v861_v0  ;;  %v734_v53 = vld [vmem:[#allocation8 + $0x74] ss:$8 sps:$4 sm:$0xff]   ;;  %v732_v54 = vld [vmem:[#allocation8 + $0x70] ss:$8 sps:$4 sm:$0xff]   ;;  %v413_v6 = vsub.s32 1, %v408_v3 }
  0x59   :  { %629 = vmatprep.subr.bf16.mxu0 %v692_v9  ;;  %v592_v56 = vld [vmem:[%s1000_s4] ss:$0 sm:$0xff]  ;;  %s864_s4 = smov [#allocation10]  }
  0x5a   :  { %v405_v5 = vld [vmem:[%s1002_s6] sm:$0x3]  ;;  %s559_s9 = sshll.u32 %s864_s4, 4  ;;  %s560_s9 = int_to_ptr.vmem [resolvable:$true] %s559_s9 }
  0x5b   :  { %659 = vmatpush3.bf16.msra.mxu1 %v706_v21  ;;  %v410_v7 = vrot.slane %v405_v5, %v409_v4  ;;  %v414_v8 = vrot.slane %v405_v5, %v413_v6  ;;  %s823_s10 = scalar_lea.vmem %s560_s9, 256  ;;  %p828_p5 = scmp.lt.s32.totalorder %s560_s9, %s560_s9 }
  0x5c   :  { %630 = vmatpush3.bf16.msra.mxu0 %v693_v10  ;;  %660 = vmatprep.subr.bf16.mxu1 %v861_v0  ;;  %p824_p4 = scmp.ne.s32.totalorder %s560_s9, %s823_s10  ;;  %p829_p6 = scmp.lt.s32.totalorder %s823_s10, %s823_s10 }
  0x5d   :  { %631 = vmatprep.subr.bf16.mxu0 %v694_v11 }
  0x5e   :  { %p830_p7 = por %p829_p6, %p828_p5 }
  0x5f   :  { %661 = vmatpush3.bf16.msra.mxu1 %v707_v23 }
  0x60   :  { %632 = vmatpush3.bf16.msra.mxu0 %v695_v12  ;;  %662 = vmatprep.subr.bf16.mxu1 %v861_v0  ;;  %p831_p8 = pnand %p830_p7, %p824_p4 }
  0x61   :  { %633 = vmatprep.subr.bf16.mxu0 %v696_v15 }
  0x63   :  { %663 = vmatpush3.bf16.msra.mxu1 %v708_v24 }
  0x64   :  { %634 = vmatpush3.bf16.msra.mxu0 %v697_v17  ;;  %664 = vmatprep.subr.bf16.mxu1 %v861_v0 }
  0x65   :  { %635 = vmatprep.subr.bf16.mxu0 %v698_v18 }
  0x67   :  { %665 = vmatpush3.bf16.msra.mxu1 %v709_v25 }
  0x68   :  { %636 = vmatpush3.bf16.msra.mxu0 %v699_v20  ;;  %666 = vmatprep.subr.bf16.mxu1 %v861_v0 }
  0x69   :  { %497 = vmatprep.subr.bf16.mxu0 %v713_v28 }
  0x6b   :  { %263 = vmatmul.mubr.bf16.vlgmr.msra.gmra.mrb[0].mxu0 %v700_v22  ;;  %667 = vmatpush3.bf16.msra.mxu1 %v710_v26 }
  0x6c   :  { %498 = vmatpush1.bf16.msra.mxu0 %v711_v27  ;;  %529 = vmatprep.mubr.bf16.mxu0 %v863_v55 }
  0x6d   :  { %499 = vmatprep.subr.bf16.mxu0 %v716_v29 }
  0x70   :  { %500 = vmatpush1.bf16.msra.mxu0 %v714_v30 }
  0x71   :  { %501 = vmatprep.subr.bf16.mxu0 %v719_v31 }
  0x74   :  { %502 = vmatpush1.bf16.msra.mxu0 %v717_v32 }
  0x75   :  { %503 = vmatprep.subr.bf16.mxu0 %v722_v33 }
  0x78   :  { %504 = vmatpush1.bf16.msra.mxu0 %v720_v34 }
  0x79   :  { %505 = vmatprep.subr.bf16.mxu0 %v725_v35 }
  0x7c   :  { %506 = vmatpush1.bf16.msra.mxu0 %v723_v36 }
  0x7d   :  { %507 = vmatprep.subr.bf16.mxu0 %v728_v37 }
  0x80   :  { %508 = vmatpush1.bf16.msra.mxu0 %v726_v38 }
  0x81   :  { %509 = vmatprep.subr.bf16.mxu0 %v731_v51 }
  0x84   :  { %510 = vmatpush1.bf16.msra.mxu0 %v729_v52 }
  0x85   :  { %511 = vmatprep.subr.bf16.mxu0 %v734_v53 }
  0x88   :  { %512 = vmatpush1.bf16.msra.mxu0 %v732_v54 }
 0x13e   :  { %v637_v39 = vpop.f32.mrb[0].mxu0 }
 0x13f   :  { %v638_v41 = vpop.f32.mrb[1].mxu0 }
 0x140   :  { %v639_v42 = vadd.f32 %v638_v41, %v637_v39  ;;  %v640_v43 = vpop.f32.mrb[2].mxu0 }
 0x141   :  { %v641_v44 = vpop.f32.mrb[3].mxu0 }
 0x142   :  { %v265_v45 = vadd.f32 %v639_v42, %v573_v40  ;;  %v642_v46 = vadd.f32 %v641_v44, %v640_v43 }
 0x144   :  { %v268_v47 = vadd.f32 %v642_v46, %v573_v40  ;;  %v271_v48 = vmax.f32 %v265_v45, 0.0 }
 0x146   :  { %v272_v49 = vmax.f32 %v268_v47, 0.0 }
 0x148   :  { %v273_v50 = vpack.c.bf16 %v272_v49, %v271_v48 }
 0x14a   :  { %669 = vmatmul.mubr.bf16.vlgmr.msra.gmra.mrb[0].mxu1 %v273_v50 }
 0x21d   :  { %v379_v57 = vpop.f32.mrb[0].mxu1 }
 0x21e   :  { %v380_v58 = vadd.f32 %v592_v56, %v379_v57  ;;  %v670_v59 = vpop.f32.mrb[1].mxu1 }
 0x21f   :  { %v382_v60 = vpop.f32.mrb[2].mxu1 }
 0x220   :  { %v383_v61 = vadd.f32 %v592_v56, %v382_v60  ;;  %v671_v62 = vpop.f32.mrb[3].mxu1  ;;  %v386_v63 = vmax.f32 %v380_v58, 0.0 }
 0x222   :  { %v387_v0 = vmax.f32 %v383_v61, 0.0 }
 0x224   :  { %v388_v1 = vpack.c.bf16 %v387_v0, %v386_v63 }
 0x226   :  { %530 = vmatmul.mubr.bf16.vlgmr.msra.gmra.mrb[4].mxu0 %v388_v1 }
 0x2f9   :  { %v531_v9 = vpop.f32.mrb[4].mxu0 }
 0x2fa   :  { %v532_v10 = vadd.f32 %v531_v9, %v410_v7  ;;  %v533_v11 = vpop.f32.mrb[5].mxu0 }
 0x2fb   :  { %v534_v12 = vadd.f32 %v533_v11, %v414_v8  ;;  %v535_v13 = vpop.f32.mrb[6].mxu0 }
 0x2fc   :  { %v536_v14 = vadd.f32 %v535_v13, %v410_v7  ;;  %v537_v15 = vpop.f32.mrb[7].mxu0 }
 0x2fd   :  { %v619_v16 = vpack.c.bf16 %v534_v12, %v532_v10  ;;  %v538_v17 = vadd.f32 %v537_v15, %v414_v8 }
 0x2ff   :  { %552 = vst [vmem:[#allocation10] sm:$0xff] %v619_v16  ;;  %v620_v18 = vpack.c.bf16 %v538_v17, %v536_v14 }
 0x301   :  { %553 = vst [vmem:[#allocation10 + $0x8] sm:$0xff] %v620_v18 }
 0x302   :  { %834 = shalt.err (!%p831_p8)
}
 0x303   :  { %s835_s14 = scalar_lea.hbm %s1003_s7, 256 }
 0x304   :  { %p836_p9 = scmp.ne.s32.totalorder %s1003_s7, %s835_s14  ;;  %p839_p10 = scmp.lt.u32.totalorder %s835_s14, %s1003_s7 }
 0x306   :  { %p841_p11 = pnand %p839_p10, %p836_p9 }
 0x308   :  { %844 = shalt.err (!%p841_p11)
}
 0x309   :  { %565 = dma.vmem_to_hbm [thread:$0]  %s560_s9, 256, %s1003_s7, [#allocation4], %s857_s1, %s857_s1, %s858_s25  }
 0x30a   :  { %851 = dma.done.wait [#allocation4], 256  }
 0x30b   :  { %852 = vsyncadd [#allocation4], 4294967040 }
 0x30c   :  { %569 = vsyncpa [#allocation3], 1 }
 0x30d   :  { %570 = vsyncpa [#allocation6], 1 }
 0x30e   :  { %571 = vsyncpa [#allocation9], 1 }
 0x30f   :  { %572 = vsyncpa [#allocation4], 1 }

</bundles_post_ra>
